<compile_context>
chip_gen: v6e
topology: v6e:2x2x1
jax: 0.10.0
libtpu: 0.0.40
codegen_flags: <defaults>
</compile_context>

<pallas_src>
import functools

import jax
import jax.numpy as jnp
from jax import lax
from jax.experimental import pallas as pl
from jax.experimental.pallas import tpu as pltpu

block_size = 8
n_embd = 32
vocab_size = 65          # e.g. tiny-Shakespeare charset size; fixed in-script
V_PAD = 128              # vocab padded to a lane-dense multiple of 128
EMB_ROWS = 2 * V_PAD     # stacked [token | position] embedding table rows
TILE_N_MAX = 1024        # rows per grid step; sized for v7x VMEM headroom


def _padded_row_count(n):
    """Pad flattened row count to a sublane/tile friendly multiple."""
    if n <= TILE_N_MAX:
        return max(8, -(-n // 8) * 8)          # single tile, multiple of 8
    return -(-n // TILE_N_MAX) * TILE_N_MAX    # multiple of TILE_N_MAX


# ---------------------------------------------------------------------------
# Kernel helpers / kernels
# ---------------------------------------------------------------------------
def _tile_logits(idx_col, emb_tab, w_t, b_row, *, seq_len, base):
    """Padded logits (tile_n, V_PAD) for flattened rows base + [0, tile_n)."""
    tile_n = idx_col.shape[0]
    row = lax.broadcasted_iota(jnp.int32, (tile_n, 1), 0)          # local rows
    pos = (base + row) % seq_len                                   # t = n % T
    col = lax.broadcasted_iota(jnp.int32, (tile_n, EMB_ROWS), 1)
    # Combined one-hot: token hit in cols [0, V_PAD), position hit in
    # cols [V_PAD, 2*V_PAD).  One MXU pass yields tok_emb + pos_emb.
    tok_hit = jnp.logical_and(col < V_PAD, col == idx_col)
    pos_hit = jnp.logical_and(col >= V_PAD, col == pos + V_PAD)
    onehot = jnp.logical_or(tok_hit, pos_hit).astype(jnp.float32)  # (tile_n, 256)
    x2d = jnp.dot(onehot, emb_tab, preferred_element_type=jnp.float32)  # (tile_n, C)
    # lm_head: weight already pre-transposed to (C, V_PAD) -> plain jnp.dot.
    logits = jnp.dot(x2d, w_t, preferred_element_type=jnp.float32)      # (tile_n, 128)
    return logits + b_row, row


def _logits_kernel(idx_ref, emb_ref, w_ref, b_ref, logits_ref, *, seq_len):
    base = pl.program_id(0) * idx_ref.shape[0]
    logits, _ = _tile_logits(idx_ref[...], emb_ref[...], w_ref[...], b_ref[...],
                             seq_len=seq_len, base=base)
    logits_ref[...] = logits


def _fused_kernel(idx_ref, tgt_ref, emb_ref, w_ref, b_ref,
                  logits_ref, loss_ref, *, seq_len, n_rows, valid_v):
    """Logits + per-tile cross-entropy partial sum (no HBM round-trip)."""
    tile_n = idx_ref.shape[0]
    base = pl.program_id(0) * tile_n
    logits, row = _tile_logits(idx_ref[...], emb_ref[...], w_ref[...], b_ref[...],
                               seq_len=seq_len, base=base)
    logits_ref[...] = logits                                        # (tile_n, 128)

    colv = lax.broadcasted_iota(jnp.int32, (tile_n, V_PAD), 1)
    # Keep softmax / LSE math in f32 (pad columns masked with -1e30).
    masked = jnp.where(colv < valid_v, logits, jnp.float32(-1e30))
    m = jnp.max(masked, axis=-1, keepdims=True)
    lse = m + jnp.log(jnp.sum(jnp.exp(masked - m), axis=-1, keepdims=True))
    # NOTE: assumes targets in [0, valid_v); out-of-range ids silently pick a
    # padded (zero) column, matching the previous behaviour.
    onehot_t = (tgt_ref[...] == colv).astype(jnp.float32)
    picked = jnp.sum(onehot_t * logits, axis=-1, keepdims=True)
    per_row = lse - picked                                          # (tile_n, 1)
    valid_row = (base + row) < n_rows                               # mask pad rows
    loss_ref[0, 0] = jnp.sum(jnp.where(valid_row, per_row, 0.0))    # SMEM scalar


# ---------------------------------------------------------------------------
# pallas_call wrappers
# ---------------------------------------------------------------------------
def _param_specs():
    """Parameters: constant index maps -> VMEM-resident across grid steps."""
    return [
        pl.BlockSpec((EMB_ROWS, n_embd), lambda i: (0, 0)),   # emb_tab
        pl.BlockSpec((n_embd, V_PAD), lambda i: (0, 0)),      # w_t
        pl.BlockSpec((1, V_PAD), lambda i: (0, 0)),           # b_row
    ]


@functools.partial(jax.jit, static_argnames=("seq_len",))
def _logits_call(idx_col, emb_tab, w_t, b_row, *, seq_len):
    n_pad = idx_col.shape[0]
    tile_n = min(TILE_N_MAX, n_pad)
    grid = (n_pad // tile_n,)
    return pl.pallas_call(
        functools.partial(_logits_kernel, seq_len=seq_len),
        out_shape=jax.ShapeDtypeStruct((n_pad, V_PAD), jnp.float32),
        grid=grid,
        in_specs=[pl.BlockSpec((tile_n, 1), lambda i: (i, 0))] + _param_specs(),
        out_specs=pl.BlockSpec((tile_n, V_PAD), lambda i: (i, 0)),
        compiler_params=pltpu.CompilerParams(
            dimension_semantics=("parallel",)),
    )(idx_col, emb_tab, w_t, b_row)


@functools.partial(jax.jit, static_argnames=("seq_len", "n_rows"))
def _fused_call(idx_col, tgt_col, emb_tab, w_t, b_row, *, seq_len, n_rows):
    n_pad = idx_col.shape[0]
    tile_n = min(TILE_N_MAX, n_pad)
    num_tiles = n_pad // tile_n
    logits_pad, partials = pl.pallas_call(
        functools.partial(_fused_kernel, seq_len=seq_len, n_rows=n_rows,
                          valid_v=vocab_size),
        out_shape=(jax.ShapeDtypeStruct((n_pad, V_PAD), jnp.float32),
                   jax.ShapeDtypeStruct((num_tiles, 1), jnp.float32)),
        grid=(num_tiles,),
        in_specs=[pl.BlockSpec((tile_n, 1), lambda i: (i, 0)),     # idx
                  pl.BlockSpec((tile_n, 1), lambda i: (i, 0))]     # target
                 + _param_specs(),
        out_specs=(pl.BlockSpec((tile_n, V_PAD), lambda i: (i, 0)),
                   pl.BlockSpec((1, 1), lambda i: (i, 0),
                                memory_space=pltpu.MemorySpace.SMEM)),
        compiler_params=pltpu.CompilerParams(
            dimension_semantics=("parallel",)),
    )(idx_col, tgt_col, emb_tab, w_t, b_row)
    # Finish the mean in XLA so the row axis can stay "parallel" (v7x megacore).
    loss = jnp.sum(partials) / jnp.float32(n_rows)
    return logits_pad, loss


# ---------------------------------------------------------------------------
# Params / forward
# ---------------------------------------------------------------------------
def _pad_rows(a, rows):
    return jnp.pad(a, ((0, rows - a.shape[0]), (0, 0)))


def init_params(key):
    """Raw params (PyTorch shapes) + one-time padded/stacked kernel layouts."""
    k_tok, k_pos, k_w, k_b = jax.random.split(key, 4)
    tok_table = jax.random.normal(k_tok, (vocab_size, n_embd), jnp.float32)
    pos_table = jax.random.normal(k_pos, (block_size, n_embd), jnp.float32)
    bound = 1.0 / jnp.sqrt(n_embd)
    lm_w = jax.random.uniform(k_w, (vocab_size, n_embd), jnp.float32, -bound, bound)
    lm_b = jax.random.uniform(k_b, (vocab_size,), jnp.float32, -bound, bound)

    # Amortized layout prep (done once, reused by every forward call).
    emb_tab = jnp.concatenate([_pad_rows(tok_table, V_PAD),
                               _pad_rows(pos_table, V_PAD)], axis=0)       # (256, C)
    w_t = _pad_rows(lm_w, V_PAD).T                                         # (C, 128)
    b_row = jnp.pad(lm_b, (0, V_PAD - vocab_size)).reshape(1, V_PAD)       # (1, 128)
    return {"tok_table": tok_table, "pos_table": pos_table,
            "lm_w": lm_w, "lm_b": lm_b,
            "emb_tab": emb_tab, "w_t": w_t, "b_row": b_row}


def bigram_forward(params, idx, target=None, pad_vocab=False):
    """Mirrors BigramModel.forward: returns (logits, loss).

    pad_vocab=True returns the lane-dense V_PAD-wide logits slab (no post-kernel
    65-wide slice); slice at the final consumer (e.g. only the last time step).
    """
    idx = idx.astype(jnp.int32)
    B, T = idx.shape
    assert T <= block_size, "sequence length exceeds block_size"
    n = B * T
    n_pad = _padded_row_count(n)

    idx_col = idx.reshape(n, 1)
    if n_pad != n:
        idx_col = jnp.pad(idx_col, ((0, n_pad - n), (0, 0)))

    if target is None:
        logits_pad = _logits_call(idx_col, params["emb_tab"], params["w_t"],
                                  params["b_row"], seq_len=T)
        logits_pad = logits_pad[:n].reshape(B, T, V_PAD)
        if pad_vocab:
            return logits_pad, None
        return logits_pad[..., :vocab_size], None

    tgt_col = target.astype(jnp.int32).reshape(n, 1)
    if n_pad != n:
        tgt_col = jnp.pad(tgt_col, ((0, n_pad - n), (0, 0)))
    logits_pad, loss = _fused_call(idx_col, tgt_col, params["emb_tab"],
                                   params["w_t"], params["b_row"],
                                   seq_len=T, n_rows=n)
    logits_pad = logits_pad[:n]
    if pad_vocab:
        return logits_pad, loss
    return logits_pad[:, :vocab_size], loss


# ---------------------------------------------------------------------------
# Demo / smoke test
# ---------------------------------------------------------------------------
if __name__ == "__main__":
    key = jax.random.PRNGKey(0)
    k_params, k_idx, k_tgt = jax.random.split(key, 3)
    params = init_params(k_params)

    def ref_forward(idx, target=None):
        T = idx.shape[1]
        tok_emb = params["tok_table"][idx]                       # (B, T, C)
        pos_emb = params["pos_table"][:T]                        # (T, C)
        x = tok_emb + pos_emb[None]
        logits = x @ params["lm_w"].T + params["lm_b"]           # (B, T, V)
        if target is None:
            return logits, None
        l2 = logits.reshape(-1, vocab_size)
        t = target.reshape(-1)
        loss = jnp.mean(jax.nn.logsumexp(l2, axis=-1)
                        - jnp.take_along_axis(l2, t[:, None], axis=-1)[:, 0])
        return l2, loss

    # --- small shapes (single tile) ---------------------------------------
    B, T = 2, block_size
    idx = jax.random.randint(k_idx, (B, T), 0, vocab_size, jnp.int32)
    target = jax.random.randint(k_tgt, (B, T), 0, vocab_size, jnp.int32)

    # Path 1: no target -> (B, T, V) logits, loss=None
    logits_only, loss_none = bigram_forward(params, idx)
    jax.block_until_ready(logits_only)
    assert logits_only.shape == (B, T, vocab_size) and loss_none is None
    ref_logits, _ = ref_forward(idx)
    assert jnp.allclose(logits_only, ref_logits, atol=1e-4, rtol=1e-4)

    # Lane-dense inference path: slice only at the consumer.
    logits_padded, _ = bigram_forward(params, idx, pad_vocab=True)
    jax.block_until_ready(logits_padded)
    assert logits_padded.shape == (B, T, V_PAD)
    assert jnp.allclose(logits_padded[..., :vocab_size], ref_logits,
                        atol=1e-4, rtol=1e-4)

    # Path 2: with target -> (B*T, V) logits, scalar loss (single fused kernel)
    logits2d, loss = bigram_forward(params, idx, target=target)
    jax.block_until_ready((logits2d, loss))
    assert logits2d.shape == (B * T, vocab_size) and loss.shape == ()
    ref2d, ref_loss = ref_forward(idx, target)
    assert jnp.allclose(logits2d, ref2d, atol=1e-4, rtol=1e-4)
    assert jnp.allclose(loss, ref_loss, atol=1e-4, rtol=1e-4)

    # --- larger batch: exercises the multi-tile grid + row masking ---------
    B2 = 160                                  # N = 1280 -> 2 tiles of 1024 rows
    kb_i, kb_t = jax.random.split(jax.random.PRNGKey(1))
    idx2 = jax.random.randint(kb_i, (B2, T), 0, vocab_size, jnp.int32)
    tgt2 = jax.random.randint(kb_t, (B2, T), 0, vocab_size, jnp.int32)
    logits2, loss2 = bigram_forward(params, idx2, target=tgt2)
    jax.block_until_ready((logits2, loss2))
    ref_l2, ref_loss2 = ref_forward(idx2, tgt2)
    assert jnp.allclose(logits2, ref_l2, atol=1e-4, rtol=1e-4)
    assert jnp.allclose(loss2, ref_loss2, atol=1e-4, rtol=1e-4)

    print("KERNEL_OK")
</pallas_src>

<mosaic_0001>
module attributes {stable_mosaic.version = 11 : i64} {
  func.func @_logits_kernel(%arg0: i32, %arg1: memref<16x1xi32, #tpu.memory_space<vmem>>, %arg2: memref<256x32xf32, #tpu.memory_space<vmem>>, %arg3: memref<32x128xf32, #tpu.memory_space<vmem>>, %arg4: memref<1x128xf32, #tpu.memory_space<vmem>>, %arg5: memref<16x128xf32, #tpu.memory_space<vmem>>) attributes {dimension_semantics = [#tpu.dimension_semantics<parallel>], iteration_bounds = array<i64: 1>, scalar_prefetch = 0 : i64, scratch_operands = 0 : i64, tpu.core_type = #tpu.core_type<tc>, window_params = [{transform_indices = @transform_0, window_bounds = array<i64: 16, 1>}, {pipeline_mode = #tpu.pipeline_mode<synchronous>, transform_indices = @transform_1, window_bounds = array<i64: 256, 32>}, {pipeline_mode = #tpu.pipeline_mode<synchronous>, transform_indices = @transform_2, window_bounds = array<i64: 32, 128>}, {pipeline_mode = #tpu.pipeline_mode<synchronous>, transform_indices = @transform_3, window_bounds = array<i64: 1, 128>}, {transform_indices = @transform_4, window_bounds = array<i64: 16, 128>}]} {
    %c16_i32 = arith.constant 16 : i32
    %0 = arith.muli %arg0, %c16_i32 : i32
    %c0 = arith.constant 0 : index
    %c0_0 = arith.constant 0 : index
    %1 = vector.load %arg1[%c0, %c0_0] : memref<16x1xi32, #tpu.memory_space<vmem>>, vector<16x1xi32>
    %c0_1 = arith.constant 0 : index
    %c0_2 = arith.constant 0 : index
    %2 = vector.load %arg2[%c0_1, %c0_2] : memref<256x32xf32, #tpu.memory_space<vmem>>, vector<256x32xf32>
    %c0_3 = arith.constant 0 : index
    %c0_4 = arith.constant 0 : index
    %3 = vector.load %arg3[%c0_3, %c0_4] : memref<32x128xf32, #tpu.memory_space<vmem>>, vector<32x128xf32>
    %c0_5 = arith.constant 0 : index
    %c0_6 = arith.constant 0 : index
    %4 = vector.load %arg4[%c0_5, %c0_6] : memref<1x128xf32, #tpu.memory_space<vmem>>, vector<1x128xf32>
    %5 = tpu.iota {dimensions = array<i32: 0>} : vector<16x1xi32>
    %6 = vector.broadcast %0 : i32 to vector<16x1xi32>
    %7 = arith.addi %6, %5 : vector<16x1xi32>
    %c8_i32 = arith.constant 8 : i32
    %c0_i32 = arith.constant 0 : i32
    %8 = arith.cmpi eq, %c8_i32, %c0_i32 : i32
    %c1_i32 = arith.constant 1 : i32
    %9 = arith.select %8, %c1_i32, %c8_i32 : i32
    %10 = vector.broadcast %9 : i32 to vector<16x1xi32>
    %11 = arith.remsi %7, %10 : vector<16x1xi32>
    %c0_i32_7 = arith.constant 0 : i32
    %12 = vector.broadcast %c0_i32_7 : i32 to vector<16x1xi32>
    %13 = arith.cmpi ne, %11, %12 : vector<16x1xi32>
    %c0_i32_8 = arith.constant 0 : i32
    %14 = vector.broadcast %c0_i32_8 : i32 to vector<16x1xi32>
    %15 = arith.cmpi slt, %11, %14 : vector<16x1xi32>
    %c0_i32_9 = arith.constant 0 : i32
    %16 = arith.cmpi slt, %9, %c0_i32_9 : i32
    %17 = vector.broadcast %16 : i1 to vector<16x1xi1>
    %18 = vector.broadcast %17 : vector<16x1xi1> to vector<16x1xi1>
    %19 = arith.xori %15, %18 : vector<16x1xi1>
    %20 = arith.andi %19, %13 : vector<16x1xi1>
    %21 = vector.broadcast %9 : i32 to vector<16x1xi32>
    %22 = arith.addi %11, %21 : vector<16x1xi32>
    %23 = arith.select %20, %22, %11 : vector<16x1xi1>, vector<16x1xi32>
    %24 = tpu.iota {dimensions = array<i32: 1>} : vector<16x256xi32>
    %c128_i32 = arith.constant 128 : i32
    %25 = vector.broadcast %c128_i32 : i32 to vector<16x256xi32>
    %26 = arith.cmpi slt, %24, %25 : vector<16x256xi32>
    %27 = vector.broadcast %1 : vector<16x1xi32> to vector<16x256xi32>
    %28 = arith.cmpi eq, %24, %27 : vector<16x256xi32>
    %29 = arith.andi %26, %28 : vector<16x256xi1>
    %c128_i32_10 = arith.constant 128 : i32
    %30 = vector.broadcast %c128_i32_10 : i32 to vector<16x256xi32>
    %31 = arith.cmpi sge, %24, %30 : vector<16x256xi32>
    %c128_i32_11 = arith.constant 128 : i32
    %32 = vector.broadcast %c128_i32_11 : i32 to vector<16x1xi32>
    %33 = arith.addi %23, %32 : vector<16x1xi32>
    %34 = vector.broadcast %33 : vector<16x1xi32> to vector<16x256xi32>
    %35 = arith.cmpi eq, %24, %34 : vector<16x256xi32>
    %36 = arith.andi %31, %35 : vector<16x256xi1>
    %37 = arith.ori %29, %36 : vector<16x256xi1>
    %38 = arith.extui %37 : vector<16x256xi1> to vector<16x256xi32>
    %39 = arith.sitofp %38 : vector<16x256xi32> to vector<16x256xf32>
    %cst = arith.constant dense<0.000000e+00> : vector<16x32xf32>
    %40 = tpu.matmul %39, %2, %cst {dimension_numbers = #tpu.dot_dimension_numbers<[1], [0], [0], [1], [0, 0, 1, 1], [], []>} : vector<16x256xf32>, vector<256x32xf32>, vector<16x32xf32> -> vector<16x32xf32>
    %cst_12 = arith.constant dense<0.000000e+00> : vector<16x128xf32>
    %41 = tpu.matmul %40, %3, %cst_12 {dimension_numbers = #tpu.dot_dimension_numbers<[1], [0], [0], [1], [0, 0, 1, 1], [], []>} : vector<16x32xf32>, vector<32x128xf32>, vector<16x128xf32> -> vector<16x128xf32>
    %42 = vector.broadcast %4 : vector<1x128xf32> to vector<16x128xf32>
    %43 = arith.addf %41, %42 : vector<16x128xf32>
    %c0_13 = arith.constant 0 : index
    %c0_14 = arith.constant 0 : index
    %44 = vector.load %arg5[%c0_13, %c0_14] : memref<16x128xf32, #tpu.memory_space<vmem>>, vector<16x128xf32>
    tpu.vector_store %arg5[%c0_13, %c0_14], %43 {strides = array<i32>} : memref<16x128xf32, #tpu.memory_space<vmem>>, vector<16x128xf32>,
    return
  }
  func.func @transform_0(%arg0: i32) -> (i32, i32) {
    %c0_i32 = arith.constant 0 : i32
    %c0_i32_0 = arith.constant 0 : i32
    return %arg0, %c0_i32 : i32, i32
  }
  func.func @transform_1(%arg0: i32) -> (i32, i32) {
    %c0_i32 = arith.constant 0 : i32
    %c0_i32_0 = arith.constant 0 : i32
    %c0_i32_1 = arith.constant 0 : i32
    return %c0_i32, %c0_i32_0 : i32, i32
  }
  func.func @transform_2(%arg0: i32) -> (i32, i32) {
    %c0_i32 = arith.constant 0 : i32
    %c0_i32_0 = arith.constant 0 : i32
    %c0_i32_1 = arith.constant 0 : i32
    return %c0_i32, %c0_i32_0 : i32, i32
  }
  func.func @transform_3(%arg0: i32) -> (i32, i32) {
    %c0_i32 = arith.constant 0 : i32
    %c0_i32_0 = arith.constant 0 : i32
    %c0_i32_1 = arith.constant 0 : i32
    return %c0_i32, %c0_i32_0 : i32, i32
  }
  func.func @transform_4(%arg0: i32) -> (i32, i32) {
    %c0_i32 = arith.constant 0 : i32
    %c0_i32_0 = arith.constant 0 : i32
    return %arg0, %c0_i32 : i32, i32
  }
}

</mosaic_0001>

<bundles_post_ra>
// kernel: _logits_call.1
= control target key start
LH: loop header
LB: loop body
LE: loop exit
PB: predicated region body
PF: predicated region fallthrough
CT: control target
= control target key end

     0   :  { %v58_v2 = vlaneseq  ;;  %v406_v3 = vmov 0   ;;  %v407_v24 = vmov 1.0   ;;  %s567_s0 = inlined_call_operand.vmem [shape: s32[16,1], index: 0, kind: input, shape index: {}]   ;;  %s568_s1 = inlined_call_operand.vmem [shape: f32[256,32], index: 1, kind: input, shape index: {}]   ;;  %s569_s2 = inlined_call_operand.vmem [shape: f32[32,128], index: 2, kind: input, shape index: {}]   ;;  %s570_s3 = inlined_call_operand.vmem [shape: f32[1,128], index: 3, kind: input, shape index: {}]   ;;  %s571_s4 = inlined_call_operand.hbm [shape: f32[16,128], index: 4, kind: output, shape index: {}]  }
   0x1   :  { %v19_v0 = vld [vmem:[%s567_s0] sm:$0xff]  ;;  %v52_v1 = vld [vmem:[%s568_s1 + $0xf8] sm:$0xff]  ;;  %383 = vset.pattern.permute.xlu0 %v406_v3  ;;  %v51_v5 = vld [vmem:[%s568_s1 + $0xf0] sm:$0xff] }
   0x2   :  { %323 = vmatprep.subr.mxu0 %v52_v1  ;;  %v36_v4 = vld [vmem:[%s568_s1 + $0x78] sm:$0xff]  ;;  %v35_v6 = vld [vmem:[%s568_s1 + $0x70] sm:$0xff]  ;;  %94 = vperm.xlu0 %383, %v19_v0   ;;  %v50_v7 = vld [vmem:[%s568_s1 + $0xe8] sm:$0xff]  ;;  %v454_v8 = vand.u32 127, %v58_v2  ;;  %v59_v9 = vshrl.u32 %v58_v2, 7 }
   0x3   :  { %324 = vmatpush3.msra.mxu0 %v36_v4  ;;  %v20_v10 = vld [vmem:[%s567_s0 + $0x8] sm:$0xff]  ;;  %v49_v12 = vld [vmem:[%s568_s1 + $0xe0] sm:$0xff]  ;;  %v48_v17 = vld [vmem:[%s568_s1 + $0xd8] sm:$0xff] }
   0x4   :  { %325 = vmatprep.subr.mxu0 %v51_v5  ;;  %v34_v11 = vld [vmem:[%s568_s1 + $0x68] sm:$0xff]  ;;  %v68_v13 = vand.u32 7, %v59_v9  ;;  %v466_v14 = vadd.s32 128, %v454_v8  ;;  %v60_v15 = vadd.s32 8, %v59_v9  ;;  %v33_v16 = vld [vmem:[%s568_s1 + $0x60] sm:$0xff]  ;;  %v32_v20 = vld [vmem:[%s568_s1 + $0x58] sm:$0xff] }
   0x5   :  { %326 = vmatpush3.msra.mxu0 %v35_v6  ;;  %v47_v21 = vld [vmem:[%s568_s1 + $0xd0] sm:$0xff]  ;;  %v46_v25 = vld [vmem:[%s568_s1 + $0xc8] sm:$0xff] }
   0x6   :  { %327 = vmatprep.subr.mxu0 %v50_v7  ;;  %97 = vperm.xlu0 %383, %v20_v10   ;;  %v109_v18 = vadd.s32 128, %v68_v13  ;;  %v75_v19 = vand.u32 7, %v60_v15  ;;  %v31_v23 = vld [vmem:[%s568_s1 + $0x50] sm:$0xff]  ;;  %v30_v26 = vld [vmem:[%s568_s1 + $0x48] sm:$0xff] }
   0x7   :  { %328 = vmatpush3.msra.mxu0 %v34_v11 }
   0x8   :  { %329 = vmatprep.subr.mxu0 %v49_v12  ;;  %vm112_vm0 = vcmp.eq.s32.totalorder %v466_v14, %v109_v18  ;;  %v110_v22 = vadd.s32 128, %v75_v19 }
   0x9   :  { %330 = vmatpush3.msra.mxu0 %v33_v16  ;;  %316 = vmatprep.mubr.msk.f32.mxu0 %vm112_vm0, %v407_v24 }
   0xa   :  { %331 = vmatprep.subr.mxu0 %v48_v17  ;;  %vm114_vm1 = vcmp.eq.s32.totalorder %v466_v14, %v110_v22 }
   0xb   :  { %332 = vmatpush3.msra.mxu0 %v32_v20 }
   0xc   :  { %333 = vmatprep.subr.mxu0 %v47_v21 }
   0xd   :  { %9 = vsyncpa [#allocation3], 0  ;;  %334 = vmatpush3.msra.mxu0 %v31_v23  ;;  %v45_v27 = vld [vmem:[%s568_s1 + $0xc0] sm:$0xff]  ;;  %v44_v29 = vld [vmem:[%s568_s1 + $0xb8] sm:$0xff]  ;;  %vm212_vm4 = vcmask 261120   ;;  %s408_s11 = smov [#allocation2]  }
   0xe   :  { %335 = vmatprep.subr.mxu0 %v46_v25  ;;  %v29_v28 = vld [vmem:[%s568_s1 + $0x40] sm:$0xff]  ;;  %v28_v30 = vld [vmem:[%s568_s1 + $0x38] sm:$0xff]  ;;  %v43_v31 = vld [vmem:[%s568_s1 + $0xb0] sm:$0xff]  ;;  %s301_s12 = sshll.u32 %s408_s11, 4  ;;  %s302_s12 = int_to_ptr.vmem [resolvable:$true] %s301_s12 }
   0xf   :  { %336 = vmatpush3.msra.mxu0 %v30_v26  ;;  %v27_v32 = vld [vmem:[%s568_s1 + $0x30] sm:$0xff]  ;;  %v42_v33 = vld [vmem:[%s568_s1 + $0xa8] sm:$0xff]  ;;  %v41_v35 = vld [vmem:[%s568_s1 + $0xa0] sm:$0xff]  ;;  %p389_p1 = scmp.lt.s32.totalorder %s302_s12, %s302_s12 }
  0x10   :  { %337 = vmatprep.subr.mxu0 %v45_v27  ;;  %v26_v34 = vld [vmem:[%s568_s1 + $0x28] sm:$0xff]  ;;  %v25_v36 = vld [vmem:[%s568_s1 + $0x20] sm:$0xff]  ;;  %v40_v37 = vld [vmem:[%s568_s1 + $0x98] sm:$0xff] }
  0x11   :  { %338 = vmatpush3.msra.mxu0 %v29_v28  ;;  %v24_v38 = vld [vmem:[%s568_s1 + $0x18] sm:$0xff]  ;;  %v39_v39 = vld [vmem:[%s568_s1 + $0x90] sm:$0xff]  ;;  %v38_v41 = vld [vmem:[%s568_s1 + $0x88] sm:$0xff] }
  0x12   :  { %339 = vmatprep.subr.mxu0 %v44_v29  ;;  %v23_v40 = vld [vmem:[%s568_s1 + $0x10] sm:$0xff]  ;;  %v22_v42 = vld [vmem:[%s568_s1 + $0x8] sm:$0xff]  ;;  %v37_v43 = vld [vmem:[%s568_s1 + $0x80] sm:$0xff] }
  0x13   :  { %340 = vmatpush3.msra.mxu0 %v28_v30  ;;  %v21_v44 = vld [vmem:[%s568_s1] sm:$0xff]  ;;  %v56_v47 = vld [vmem:[%s569_s2 + $0x18] sm:$0xff]  ;;  %v55_v48 = vld [vmem:[%s569_s2 + $0x10] sm:$0xff] }
  0x14   :  { %341 = vmatprep.subr.mxu0 %v43_v31  ;;  %367 = vmatprep.subr.mxu1 %v56_v47  ;;  %v54_v49 = vld [vmem:[%s569_s2 + $0x8] sm:$0xff]  ;;  %v53_v50 = vld [vmem:[%s569_s2] sm:$0xff]  ;;  %s384_s2 = scalar_lea.vmem %s302_s12, 256 }
  0x15   :  { %342 = vmatpush3.msra.mxu0 %v27_v32  ;;  %368 = vmatpush3.msra.mxu1 %v56_v47  ;;  %v320_v57 = vld [vmem:[%s570_s3] ss:$0 sm:$0xff]  ;;  %p385_p0 = scmp.ne.s32.totalorder %s302_s12, %s384_s2  ;;  %p390_p2 = scmp.lt.s32.totalorder %s384_s2, %s384_s2 }
  0x16   :  { %343 = vmatprep.subr.mxu0 %v42_v33  ;;  %369 = vmatprep.subr.mxu1 %v55_v48 }
  0x17   :  { %344 = vmatpush3.msra.mxu0 %v26_v34  ;;  %370 = vmatpush3.msra.mxu1 %v55_v48  ;;  %p391_p3 = por %p390_p2, %p389_p1 }
  0x18   :  { %345 = vmatprep.subr.mxu0 %v41_v35  ;;  %371 = vmatprep.subr.mxu1 %v54_v49 }
  0x19   :  { %346 = vmatpush3.msra.mxu0 %v25_v36  ;;  %372 = vmatpush3.msra.mxu1 %v54_v49  ;;  %p392_p4 = pnand %p391_p3, %p385_p0 }
  0x1a   :  { %347 = vmatprep.subr.mxu0 %v40_v37  ;;  %373 = vmatprep.subr.mxu1 %v53_v50 }
  0x1b   :  { %348 = vmatpush3.msra.mxu0 %v24_v38  ;;  %374 = vmatpush3.msra.mxu1 %v53_v50 }
  0x1c   :  { %349 = vmatprep.subr.mxu0 %v39_v39 }
  0x1d   :  { %350 = vmatpush3.msra.mxu0 %v23_v40 }
  0x1e   :  { %351 = vmatprep.subr.mxu0 %v38_v41 }
  0x1f   :  { %352 = vmatpush3.msra.mxu0 %v22_v42 }
  0x20   :  { %353 = vmatprep.subr.mxu0 %v37_v43 }
  0x21   :  { %354 = vmatpush3.msra.mxu0 %v21_v44 }
  0x7d   :  { %v95_v45 = vpop.permute.xlu0 %94 }
  0x7e   :  { %vm99_vm2 = vcmp.eq.s32.totalorder %v454_v8, %v95_v45 }
  0x7f   :  { %317 = vmatmul.mubr.msk.f32.vlgmr.msra.gmra.mxu0 %vm99_vm2, %v407_v24 }
  0x80   :  { %318 = vmatprep.mubr.msk.f32.mxu0 %vm114_vm1, %v407_v24 }
  0x81   :  { %v98_v46 = vpop.permute.xlu0 %97 }
  0x82   :  { %vm101_vm3 = vcmp.eq.s32.totalorder %v454_v8, %v98_v46 }
  0x83   :  { %319 = vmatmul.mubr.msk.f32.gmra.mxu0 %vm101_vm3, %v407_v24 }
 0x13f   :  { %v355_v51 = vpop.f32.mrf.mxu0 }
 0x141   :  { %v356_v52 = vpop.f32.mrf.mxu0 }
 0x142   :  { %v357_v53 = vadd.f32 %v356_v52, %v355_v51 }
 0x143   :  { %v358_v54 = vpop.f32.mrf.mxu0 }
 0x144   :  { %375 = vmatprep.mubr.msk.f32.mxu1 %vm212_vm4, %v357_v53 }
 0x145   :  { %v359_v55 = vpop.f32.mrf.mxu0 }
 0x146   :  { %v360_v56 = vadd.f32 %v359_v55, %v358_v54 }
 0x148   :  { %376 = vmatmul.mubr.msk.f32.vlgmr.msra.gmra.mxu1 %vm212_vm4, %v360_v56 }
 0x208   :  { %v377_v58 = vpop.f32.mrf.mxu1 }
 0x209   :  { %v291_v59 = vadd.f32 %v377_v58, %v320_v57 }
 0x20a   :  { %v285_v60 = vpop.f32.mrf.mxu1 }
 0x20b   :  { %295 = vst [vmem:[#allocation2 + $0x8] sm:$0xff] %v291_v59  ;;  %v286_v61 = vadd.f32 %v320_v57, %v285_v60 }
 0x20d   :  { %294 = vst [vmem:[#allocation2] sm:$0xff] %v286_v61 }
 0x20e   :  { %395 = shalt.err (!%p392_p4)
}
 0x20f   :  { %s409_s13 = smov 128   ;;  %s410_s14 = smov 8  }
 0x210   :  { %307 = dma.vmem_to_hbm [thread:$0]  %s302_s12, 256, %s571_s4, [#allocation3], %s409_s13, %s409_s13, %s410_s14  }
 0x211   :  { %404 = dma.done.wait [#allocation3], 256  }
 0x212   :  { %405 = vsyncadd [#allocation3], 4294967040 }
 0x213   :  { %311 = vsyncpa [#allocation3], 1 }

</bundles_post_ra>
